<compile_context>
chip_gen: v5e
topology: v5e:2x2
jax: 0.10.0
libtpu: 0.0.40
codegen_flags: <defaults>
</compile_context>

<pallas_src>
import jax
import jax.numpy as jnp
from jax.experimental import pallas as pl
from jax.experimental.pallas import tpu as pltpu

HIDDEN = 256


def _round_up(x, m):
    return (x + m - 1) // m * m


def critic_kernel(s_ref, a_ref, w1s_ref, w1a_ref, w2_ref, bias_ref, b3_ref,
                  out_ref):
    # In-kernel f32->bf16 cast (VPU op, hidden under the MXU) — avoids a
    # separate wrapper-side XLA pass over the activations in HBM.
    s = s_ref[...].astype(w1s_ref.dtype)
    a = a_ref[...].astype(w1a_ref.dtype)

    b1 = bias_ref[0:1, :]     # (1, H) f32
    b2 = bias_ref[1:2, :]     # (1, H) f32
    w3 = bias_ref[2:3, :]     # (1, H) f32  (layer-3 weight row)

    # Layer 1 with the concat folded in:
    #   h1 = relu(state @ W1[:sd] + action @ W1[sd:] + b1)
    h1 = jnp.dot(s, w1s_ref[...], preferred_element_type=jnp.float32)
    h1 = h1 + jnp.dot(a, w1a_ref[...], preferred_element_type=jnp.float32)
    h1 = jnp.maximum(h1 + b1, 0.0)

    # Layer 2: bf16 operands, f32 accumulation on the MXU.
    h2 = jnp.dot(h1.astype(w2_ref.dtype), w2_ref[...],
                 preferred_element_type=jnp.float32)
    h2 = jnp.maximum(h2 + b2, 0.0)

    # Layer 3 head on the VPU (multiply) + XLU (lane reduce): q[b] = h2[b,:].w3
    # The (tb,) result is stored as a lane-dense (1, tb) row.
    q = jnp.sum(h2 * w3, axis=-1) + b3_ref[0, 0]
    out_ref[0, :] = q.astype(out_ref.dtype)


def critic_forward(state, action, params, *, tile_b=1024):
    """state: (B, state_dim) f32, action: (B, action_dim) f32 -> q: (B, 1) f32."""
    w1s, w1a, w2, biases, b3 = params
    B, state_dim = state.shape
    action_dim = action.shape[1]
    H = w2.shape[0]

    # ---- batch tiling -------------------------------------------------------
    # Lane-aligned tile cap (multiple of 128 keeps the (1, tb) output block
    # legal whenever the grid has more than one step).
    tile_b = _round_up(min(tile_b, 2048), 128)
    tb = min(tile_b, _round_up(B, 8))
    if tb >= B and B >= 256:
        # A single grid step would leave one v7x TensorCore idle; split the
        # batch into two lane-aligned tiles instead (no effect on v5e/v6e).
        tb = _round_up(pl.cdiv(B, 2), 128)
    num_tiles = pl.cdiv(B, tb)          # ragged last tile handled by Pallas
    B_pad = num_tiles * tb
    grid = (num_tiles,)

    flops = 2 * B_pad * ((state_dim + action_dim) * H + H * H + H)
    bytes_accessed = (
        B_pad * (state_dim + action_dim) * 4          # f32 activations in
        + sum(int(p.size) * p.dtype.itemsize for p in params)
        + B_pad * 4)                                   # f32 q out

    out = pl.pallas_call(
        critic_kernel,
        out_shape=jax.ShapeDtypeStruct((1, B_pad), jnp.float32),
        grid=grid,
        in_specs=[
            # activations: tiled along batch (double-buffered by the pipeline)
            pl.BlockSpec((tb, state_dim), lambda i: (i, 0)),
            pl.BlockSpec((tb, action_dim), lambda i: (i, 0)),
            # weights / packed biases: constant index_map -> VMEM-resident
            pl.BlockSpec((state_dim, H), lambda i: (0, 0)),
            pl.BlockSpec((action_dim, H), lambda i: (0, 0)),
            pl.BlockSpec((H, H), lambda i: (0, 0)),
            pl.BlockSpec((3, H), lambda i: (0, 0)),
            # b3 scalar in SMEM
            pl.BlockSpec(memory_space=pltpu.MemorySpace.SMEM),
        ],
        # lane-dense output row per tile
        out_specs=pl.BlockSpec((1, tb), lambda i: (0, i)),
        compiler_params=pltpu.CompilerParams(
            dimension_semantics=("parallel",),
            vmem_limit_bytes=32 * 1024 * 1024),
        cost_estimate=pl.CostEstimate(
            flops=flops, transcendentals=0, bytes_accessed=bytes_accessed),
    )(state, action, w1s, w1a, w2, biases, b3)

    # (1, B_pad) -> (B, 1): contiguous reshape + slice (padding columns come
    # from row-local garbage in the ragged last tile and are discarded here).
    return out.reshape(B_pad, 1)[:B]


def init_critic_params(key, state_dim, action_dim, hidden=HIDDEN):
    """PyTorch nn.Linear-style init (uniform(+-1/sqrt(fan_in))).
    Weights stored transposed as (in, out); big matmul weights in bf16,
    W1 pre-split by state/action; b1 / b2 / w3-row packed into one (3, hidden)
    f32 operand; b3 is a (1, 1) f32 scalar (SMEM)."""
    in_dim = state_dim + action_dim
    k = jax.random.split(key, 6)

    def lin(kw, kb, fan_in, fan_out):
        bound = 1.0 / (fan_in ** 0.5)
        w = jax.random.uniform(kw, (fan_in, fan_out), jnp.float32, -bound, bound)
        b = jax.random.uniform(kb, (fan_out,), jnp.float32, -bound, bound)
        return w, b

    w1, b1 = lin(k[0], k[1], in_dim, hidden)
    w2, b2 = lin(k[2], k[3], hidden, hidden)
    w3, b3 = lin(k[4], k[5], hidden, 1)

    w1s = w1[:state_dim].astype(jnp.bfloat16)
    w1a = w1[state_dim:].astype(jnp.bfloat16)
    w2 = w2.astype(jnp.bfloat16)
    biases = jnp.stack([b1, b2, w3[:, 0]], axis=0).astype(jnp.float32)  # (3, H)
    b3 = b3.reshape(1, 1).astype(jnp.float32)
    return (w1s, w1a, w2, biases, b3)


def critic_reference(state, action, params):
    """Pure-JAX reference with identical bf16/f32 mixed precision."""
    w1s, w1a, w2, biases, b3 = params
    b1, b2, w3 = biases[0:1], biases[1:2], biases[2:3]
    s = state.astype(w1s.dtype)
    a = action.astype(w1a.dtype)
    h1 = (jnp.dot(s, w1s, preferred_element_type=jnp.float32)
          + jnp.dot(a, w1a, preferred_element_type=jnp.float32))
    h1 = jnp.maximum(h1 + b1, 0.0)
    h2 = jnp.dot(h1.astype(w2.dtype), w2, preferred_element_type=jnp.float32)
    h2 = jnp.maximum(h2 + b2, 0.0)
    return jnp.sum(h2 * w3, axis=-1, keepdims=True) + b3


if __name__ == "__main__":
    key = jax.random.PRNGKey(0)
    k_params, k_state, k_action = jax.random.split(key, 3)

    state_dim = 16
    action_dim = 8
    params = init_critic_params(k_params, state_dim, action_dim)

    # Small batch: single grid step (latency-floor path).
    batch = 8
    state = jax.random.normal(k_state, (batch, state_dim), jnp.float32)
    action = jax.random.normal(k_action, (batch, action_dim), jnp.float32)
    q = jax.block_until_ready(critic_forward(state, action, params))
    q_ref = critic_reference(state, action, params)
    assert q.shape == (batch, 1), q.shape
    assert jnp.allclose(q, q_ref, atol=2e-3, rtol=2e-3), "mismatch (small batch)"

    # Larger ragged batch: two parallel grid steps (v7x both-TC path) and a
    # ragged last tile (no wrapper-side padding).
    batch2 = 300
    k_s2, k_a2 = jax.random.split(k_state)
    state2 = jax.random.normal(k_s2, (batch2, state_dim), jnp.float32)
    action2 = jax.random.normal(k_a2, (batch2, action_dim), jnp.float32)
    q2 = jax.block_until_ready(critic_forward(state2, action2, params))
    q2_ref = critic_reference(state2, action2, params)
    assert q2.shape == (batch2, 1), q2.shape
    assert jnp.allclose(q2, q2_ref, atol=2e-3, rtol=2e-3), "mismatch (tiled batch)"

    print("KERNEL_OK")
</pallas_src>

<mosaic_0001>
module attributes {stable_mosaic.version = 11 : i64} {
  func.func @critic_kernel(%arg0: i32, %arg1: memref<8x16xf32, #tpu.memory_space<vmem>>, %arg2: memref<8x8xf32, #tpu.memory_space<vmem>>, %arg3: memref<16x256xbf16, #tpu.memory_space<vmem>>, %arg4: memref<8x256xbf16, #tpu.memory_space<vmem>>, %arg5: memref<256x256xbf16, #tpu.memory_space<vmem>>, %arg6: memref<3x256xf32, #tpu.memory_space<vmem>>, %arg7: memref<1x1xf32, #tpu.memory_space<smem>>, %arg8: memref<1x8xf32, #tpu.memory_space<vmem>>) attributes {dimension_semantics = [#tpu.dimension_semantics<parallel>], iteration_bounds = array<i64: 1>, scalar_prefetch = 0 : i64, scratch_operands = 0 : i64, tpu.core_type = #tpu.core_type<tc>, window_params = [{transform_indices = @transform_0, window_bounds = array<i64: 8, 16>}, {transform_indices = @transform_1, window_bounds = array<i64: 8, 8>}, {pipeline_mode = #tpu.pipeline_mode<synchronous>, transform_indices = @transform_2, window_bounds = array<i64: 16, 256>}, {pipeline_mode = #tpu.pipeline_mode<synchronous>, transform_indices = @transform_3, window_bounds = array<i64: 8, 256>}, {pipeline_mode = #tpu.pipeline_mode<synchronous>, transform_indices = @transform_4, window_bounds = array<i64: 256, 256>}, {pipeline_mode = #tpu.pipeline_mode<synchronous>, transform_indices = @transform_5, window_bounds = array<i64: 3, 256>}, {transform_indices = @transform_6, window_bounds = array<i64: 1, 1>}, {transform_indices = @transform_7, window_bounds = array<i64: 1, 8>}]} {
    %c0 = arith.constant 0 : index
    %c0_0 = arith.constant 0 : index
    %0 = vector.load %arg1[%c0, %c0_0] : memref<8x16xf32, #tpu.memory_space<vmem>>, vector<8x16xf32>
    %1 = arith.truncf %0 : vector<8x16xf32> to vector<8x16xbf16>
    %c0_1 = arith.constant 0 : index
    %c0_2 = arith.constant 0 : index
    %2 = vector.load %arg2[%c0_1, %c0_2] : memref<8x8xf32, #tpu.memory_space<vmem>>, vector<8x8xf32>
    %3 = arith.truncf %2 : vector<8x8xf32> to vector<8x8xbf16>
    %c0_3 = arith.constant 0 : index
    %c0_4 = arith.constant 0 : index
    %4 = vector.load %arg6[%c0_3, %c0_4] : memref<3x256xf32, #tpu.memory_space<vmem>>, vector<1x256xf32>
    %c1 = arith.constant 1 : index
    %c0_5 = arith.constant 0 : index
    %5 = vector.load %arg6[%c1, %c0_5] : memref<3x256xf32, #tpu.memory_space<vmem>>, vector<1x256xf32>
    %c2 = arith.constant 2 : index
    %c0_6 = arith.constant 0 : index
    %6 = vector.load %arg6[%c2, %c0_6] : memref<3x256xf32, #tpu.memory_space<vmem>>, vector<1x256xf32>
    %c0_7 = arith.constant 0 : index
    %c0_8 = arith.constant 0 : index
    %7 = vector.load %arg3[%c0_7, %c0_8] : memref<16x256xbf16, #tpu.memory_space<vmem>>, vector<16x256xbf16>
    %cst = arith.constant dense<0.000000e+00> : vector<8x256xf32>
    %8 = tpu.matmul %1, %7, %cst {dimension_numbers = #tpu.dot_dimension_numbers<[1], [0], [0], [1], [0, 0, 1, 1], [], []>} : vector<8x16xbf16>, vector<16x256xbf16>, vector<8x256xf32> -> vector<8x256xf32>
    %c0_9 = arith.constant 0 : index
    %c0_10 = arith.constant 0 : index
    %9 = vector.load %arg4[%c0_9, %c0_10] : memref<8x256xbf16, #tpu.memory_space<vmem>>, vector<8x256xbf16>
    %cst_11 = arith.constant dense<0.000000e+00> : vector<8x256xf32>
    %10 = tpu.matmul %3, %9, %cst_11 {dimension_numbers = #tpu.dot_dimension_numbers<[1], [0], [0], [1], [0, 0, 1, 1], [], []>} : vector<8x8xbf16>, vector<8x256xbf16>, vector<8x256xf32> -> vector<8x256xf32>
    %11 = arith.addf %8, %10 : vector<8x256xf32>
    %12 = vector.broadcast %4 : vector<1x256xf32> to vector<8x256xf32>
    %13 = arith.addf %11, %12 : vector<8x256xf32>
    %cst_12 = arith.constant 0.000000e+00 : f32
    %14 = vector.broadcast %cst_12 : f32 to vector<8x256xf32>
    %15 = arith.maximumf %13, %14 : vector<8x256xf32>
    %16 = arith.truncf %15 : vector<8x256xf32> to vector<8x256xbf16>
    %c0_13 = arith.constant 0 : index
    %c0_14 = arith.constant 0 : index
    %17 = vector.load %arg5[%c0_13, %c0_14] : memref<256x256xbf16, #tpu.memory_space<vmem>>, vector<256x256xbf16>
    %cst_15 = arith.constant dense<0.000000e+00> : vector<8x256xf32>
    %18 = tpu.matmul %16, %17, %cst_15 {dimension_numbers = #tpu.dot_dimension_numbers<[1], [0], [0], [1], [0, 0, 1, 1], [], []>} : vector<8x256xbf16>, vector<256x256xbf16>, vector<8x256xf32> -> vector<8x256xf32>
    %19 = vector.broadcast %5 : vector<1x256xf32> to vector<8x256xf32>
    %20 = arith.addf %18, %19 : vector<8x256xf32>
    %cst_16 = arith.constant 0.000000e+00 : f32
    %21 = vector.broadcast %cst_16 : f32 to vector<8x256xf32>
    %22 = arith.maximumf %20, %21 : vector<8x256xf32>
    %23 = vector.broadcast %6 : vector<1x256xf32> to vector<8x256xf32>
    %24 = arith.mulf %22, %23 : vector<8x256xf32>
    %cst_17 = arith.constant dense<0.000000e+00> : vector<8xf32>
    %25 = vector.multi_reduction <add>, %24, %cst_17 [1] : vector<8x256xf32> to vector<8xf32>
    %c0_18 = arith.constant 0 : index
    %c0_19 = arith.constant 0 : index
    %26 = memref.load %arg7[%c0_18, %c0_19] : memref<1x1xf32, #tpu.memory_space<smem>>
    %27 = vector.broadcast %26 : f32 to vector<8xf32>
    %28 = arith.addf %25, %27 : vector<8xf32>
    %c0_20 = arith.constant 0 : index
    %c0_21 = arith.constant 0 : index
    %29 = vector.load %arg8[%c0_20, %c0_21] : memref<1x8xf32, #tpu.memory_space<vmem>>, vector<1x8xf32>
    %30 = vector.shape_cast %29 : vector<1x8xf32> to vector<8xf32>
    %31 = vector.shape_cast %28 : vector<8xf32> to vector<1x8xf32>
    tpu.vector_store %arg8[%c0_20, %c0_21], %31 {strides = array<i32>} : memref<1x8xf32, #tpu.memory_space<vmem>>, vector<1x8xf32>,
    return
  }
  func.func @transform_0(%arg0: i32) -> (i32, i32) {
    %c0_i32 = arith.constant 0 : i32
    %c0_i32_0 = arith.constant 0 : i32
    return %arg0, %c0_i32 : i32, i32
  }
  func.func @transform_1(%arg0: i32) -> (i32, i32) {
    %c0_i32 = arith.constant 0 : i32
    %c0_i32_0 = arith.constant 0 : i32
    return %arg0, %c0_i32 : i32, i32
  }
  func.func @transform_2(%arg0: i32) -> (i32, i32) {
    %c0_i32 = arith.constant 0 : i32
    %c0_i32_0 = arith.constant 0 : i32
    %c0_i32_1 = arith.constant 0 : i32
    return %c0_i32, %c0_i32_0 : i32, i32
  }
  func.func @transform_3(%arg0: i32) -> (i32, i32) {
    %c0_i32 = arith.constant 0 : i32
    %c0_i32_0 = arith.constant 0 : i32
    %c0_i32_1 = arith.constant 0 : i32
    return %c0_i32, %c0_i32_0 : i32, i32
  }
  func.func @transform_4(%arg0: i32) -> (i32, i32) {
    %c0_i32 = arith.constant 0 : i32
    %c0_i32_0 = arith.constant 0 : i32
    %c0_i32_1 = arith.constant 0 : i32
    return %c0_i32, %c0_i32_0 : i32, i32
  }
  func.func @transform_5(%arg0: i32) -> (i32, i32) {
    %c0_i32 = arith.constant 0 : i32
    %c0_i32_0 = arith.constant 0 : i32
    %c0_i32_1 = arith.constant 0 : i32
    return %c0_i32, %c0_i32_0 : i32, i32
  }
  func.func @transform_6(%arg0: i32) -> (i32, i32) {
    %c0_i32 = arith.constant 0 : i32
    %c0_i32_0 = arith.constant 0 : i32
    %c0_i32_1 = arith.constant 0 : i32
    return %c0_i32, %c0_i32_0 : i32, i32
  }
  func.func @transform_7(%arg0: i32) -> (i32, i32) {
    %c0_i32 = arith.constant 0 : i32
    %c0_i32_0 = arith.constant 0 : i32
    return %c0_i32, %arg0 : i32, i32
  }
}

</mosaic_0001>

<bundles_post_ra>
// kernel: tpu_custom_call.1
= control target key start
LH: loop header
LB: loop body
LE: loop exit
PB: predicated region body
PF: predicated region fallthrough
CT: control target
= control target key end

     0   :  { %13 = vsyncpa [#allocation4], 0  ;;  %s951_s0 = inlined_call_operand.hbm [shape: f32[8,16], index: 0, kind: input, shape index: {}]   ;;  %s952_s1 = inlined_call_operand.hbm [shape: f32[8,8], index: 1, kind: input, shape index: {}]   ;;  %s953_s2 = inlined_call_operand.hbm [shape: bf16[16,256], index: 2, kind: input, shape index: {}]   ;;  %s954_s3 = inlined_call_operand.hbm [shape: bf16[8,256], index: 3, kind: input, shape index: {}]   ;;  %s955_s4 = inlined_call_operand.hbm [shape: bf16[256,256], index: 4, kind: input, shape index: {}]   ;;  %s956_s5 = inlined_call_operand.hbm [shape: f32[3,256], index: 5, kind: input, shape index: {}]   ;;  %s957_s6 = inlined_call_operand.<no memory space> [shape: f32[1,1], index: 6, kind: input, shape index: {}]   ;;  %s958_s7 = inlined_call_operand.hbm [shape: f32[1,8], index: 7, kind: output, shape index: {}]  }
   0x1   :  { %14 = vsyncpa [#allocation7], 0 }
   0x2   :  { %15 = vsyncpa [#allocation10], 0 }
   0x3   :  { %16 = vsyncpa [#allocation13], 0  ;;  %s34_s26 = sshll.u32 %s952_s1, 4  ;;  %s35_s26 = int_to_ptr.hbm [resolvable:$true] %s34_s26 }
   0x4   :  { %17 = vsyncpa [#allocation5], 0  ;;  %s872_s27 = smov [#allocation6]   ;;  %s58_s8 = sshll.u32 %s954_s3, 4  ;;  %s59_s8 = int_to_ptr.hbm [resolvable:$true] %s58_s8 }
   0x5   :  { %s36_s28 = sshll.u32 %s872_s27, 4  ;;  %s873_s9 = smov [#allocation9]   ;;  %s37_s28 = int_to_ptr.vmem [resolvable:$true] %s36_s28 }
   0x6   :  { %39 = dma.hbm_to_vmem [thread:$0]  %s35_s26, 128, %s37_s28, [#allocation7]  }
   0x7   :  { %s60_s10 = sshll.u32 %s873_s9, 4  ;;  %s23_s13 = sshll.u32 %s951_s0, 4  ;;  %s61_s10 = int_to_ptr.vmem [resolvable:$true] %s60_s10  ;;  %s24_s13 = int_to_ptr.hbm [resolvable:$true] %s23_s13 }
   0x8   :  { %63 = dma.hbm_to_vmem [thread:$0]  %s59_s8, 128, %s61_s10, [#allocation10]  }
   0x9   :  { %s44_s15 = sshll.u32 %s953_s2, 4  ;;  %s874_s16 = smov [#allocation3]   ;;  %s45_s15 = int_to_ptr.hbm [resolvable:$true] %s44_s15 }
   0xa   :  { %s25_s17 = sshll.u32 %s874_s16, 4  ;;  %s875_s3 = smov [#allocation8]   ;;  %s26_s17 = int_to_ptr.vmem [resolvable:$true] %s25_s17 }
   0xb   :  { %28 = dma.hbm_to_vmem [thread:$0]  %s24_s13, 128, %s26_s17, [#allocation4]  }
   0xc   :  { %s46_s18 = sshll.u32 %s875_s3, 4  ;;  %s876_s19 = smov 128   ;;  %s47_s18 = int_to_ptr.vmem [resolvable:$true] %s46_s18 }
   0xd   :  { %s877_s20 = smov 8   ;;  %s68_s22 = sshll.u32 %s955_s4, 4  ;;  %s69_s22 = int_to_ptr.hbm [resolvable:$true] %s68_s22 }
   0xe   :  { %52 = dma.hbm_to_vmem [thread:$0]  %s45_s15, 256, %s47_s18, [#allocation7], %s876_s19, %s876_s19, %s877_s20  }
   0xf   :  { %s878_s23 = smov [#allocation11]   ;;  %s82_s26 = sshll.u32 %s956_s5, 4  ;;  %s83_s26 = int_to_ptr.hbm [resolvable:$true] %s82_s26 }
  0x10   :  { %s70_s24 = sshll.u32 %s878_s23, 4  ;;  %s879_s27 = smov [#allocation12]   ;;  %s71_s24 = int_to_ptr.vmem [resolvable:$true] %s70_s24 }
  0x11   :  { %76 = dma.hbm_to_vmem [thread:$0]  %s69_s22, 4096, %s71_s24, [#allocation10], %s876_s19, %s876_s19, %s877_s20  }
  0x12   :  { %s84_s28 = sshll.u32 %s879_s27, 4  ;;  %s85_s28 = int_to_ptr.vmem [resolvable:$true] %s84_s28 }
  0x13   :  { %87 = dma.hbm_to_vmem [thread:$0]  %s83_s26, 128, %s85_s28, [#allocation13]  }
  0x14   :  { %862 = dma.done.wait [#allocation4], 128  }
  0x15   :  { %863 = vsyncadd [#allocation4], 4294967168 }
  0x16   :  { %864 = dma.done.wait [#allocation7], 384  }
  0x17   :  { %865 = vsyncadd [#allocation7], 4294966912 }
  0x18   :  { %866 = dma.done.wait [#allocation10], 4224  }
  0x19   :  { %867 = vsyncadd [#allocation10], 4294963072 }
  0x1a   :  { %868 = dma.done.wait [#allocation13], 128  }
  0x1b   :  { %869 = vsyncadd [#allocation13], 4294967168  ;;  %v515_v0 = vld [vmem:[#allocation8] sm:$0xf]  ;;  %v652_v1 = vld [vmem:[#allocation8 + $0x4] sm:$0xf0] }
  0x1c   :  { %v651_v2 = vld [vmem:[#allocation8 + $0x4] sm:$0xf]  ;;  %v516_v3 = vor.u32 %v652_v1, %v515_v0  ;;  %v517_v4 = vld [vmem:[#allocation8 + $0x8] sm:$0xf0]  ;;  %v126_v5 = vld [vmem:[#allocation9] sm:$0xff]  ;;  %vm136_vm0 = vcmask 1043456  }
  0x1d   :  { %v115_v6 = vld [vmem:[#allocation3] sm:$0xff]  ;;  %vm179_vm1 = vcmask 130048   ;;  %v520_v7 = vor.u32 %v651_v2, %v517_v4  ;;  %v128_v8 = vunpack.c.l.b16 %v126_v5  ;;  %v129_v9 = vunpack.c.h.b16 %v126_v5  ;;  %v117_v11 = vld [vmem:[#allocation6] sm:$0xff]  ;;  %v581_v12 = vld [vmem:[#allocation11 + $0x70] sm:$0xf]  ;;  %s880_s29 = smov [#allocation14]  }
  0x1e   :  { %v116_v10 = vpack.c.bf16 %v115_v6, %v115_v6  ;;  %v668_v13 = vld [vmem:[#allocation11 + $0x74] sm:$0xf0]  ;;  %190 = vmatpush.bf16.msra.mxu2 %v516_v3  ;;  %v645_v14 = vld [vmem:[#allocation11 + $0xf0] sm:$0xf]  ;;  %v667_v16 = vld [vmem:[#allocation11 + $0x74] sm:$0xf]  ;;  %v118_v30 = vpack.c.bf16 %v117_v11, %v117_v11 }
  0x1f   :  { %v684_v15 = vld [vmem:[#allocation11 + $0xf4] sm:$0xf0]  ;;  %203 = vmatpush.bf16.msra.mxu3 %v520_v7  ;;  %v130_v17 = vpack.c.b16 %v128_v8, %v128_v8  ;;  %v131_v18 = vpack.c.b16 %v129_v9, %v129_v9  ;;  %v582_v19 = vor.u32 %v668_v13, %v581_v12  ;;  %v583_v20 = vld [vmem:[#allocation11 + $0x78] sm:$0xf0]  ;;  %v683_v21 = vld [vmem:[#allocation11 + $0xf4] sm:$0xf] }
  0x20   :  { %v647_v22 = vld [vmem:[#allocation11 + $0xf8] sm:$0xf0]  ;;  %v646_v23 = vor.u32 %v684_v15, %v645_v14  ;;  %v586_v24 = vor.u32 %v667_v16, %v583_v20  ;;  %v573_v25 = vld [vmem:[#allocation11 + $0x60] sm:$0xf]  ;;  %v666_v26 = vld [vmem:[#allocation11 + $0x64] sm:$0xf0] }
  0x21   :  { %v637_v27 = vld [vmem:[#allocation11 + $0xe0] sm:$0xf]  ;;  %v138_v28 = vsel %vm136_vm0, %v130_v17, 0  ;;  %v141_v29 = vsel %vm136_vm0, %v131_v18, 0  ;;  %521 = vmatmul.msk.bf16.vlgmr.msra.gmra.mxu2 %vm179_vm1, %v116_v10  ;;  %v682_v31 = vld [vmem:[#allocation11 + $0xe4] sm:$0xf0]  ;;  %v650_v33 = vor.u32 %v683_v21, %v647_v22  ;;  %v574_v35 = vor.u32 %v666_v26, %v573_v25 }
  0x22   :  { %v665_v32 = vld [vmem:[#allocation11 + $0x64] sm:$0xf]  ;;  %150 = vmatpush.bf16.msra.mxu0 %v138_v28  ;;  %163 = vmatpush.bf16.msra.mxu1 %v141_v29  ;;  %vm132_vm2 = vcmask 64512   ;;  %v575_v34 = vld [vmem:[#allocation11 + $0x68] sm:$0xf0]  ;;  %v638_v38 = vor.u32 %v682_v31, %v637_v27  ;;  %s496_s30 = sshll.u32 %s880_s29, 4  ;;  %s497_s30 = int_to_ptr.vmem [resolvable:$true] %s496_s30 }
  0x23   :  { %522 = vmatmul.msk.bf16.vlgmr.msra.gmra.mxu3 %vm179_vm1, %v116_v10  ;;  %v681_v36 = vld [vmem:[#allocation11 + $0xe4] sm:$0xf]  ;;  %v639_v37 = vld [vmem:[#allocation11 + $0xe8] sm:$0xf0]  ;;  %443 = vmatpush.bf16.msrb.mxu2 %v586_v24  ;;  %v578_v39 = vor.u32 %v665_v32, %v575_v34  ;;  %v565_v40 = vld [vmem:[#allocation11 + $0x50] sm:$0xf] }
  0x24   :  { %v664_v41 = vld [vmem:[#allocation11 + $0x54] sm:$0xf0]  ;;  %v629_v42 = vld [vmem:[#allocation11 + $0xd0] sm:$0xf]  ;;  %v663_v44 = vld [vmem:[#allocation11 + $0x54] sm:$0xf]  ;;  %456 = vmatpush.bf16.msrb.mxu3 %v650_v33  ;;  %v642_v46 = vor.u32 %v681_v36, %v639_v37 }
  0x25   :  { %511 = vmatmul.msk.bf16.vlgmr.msra.gmra.mxu0 %vm132_vm2, %v118_v30  ;;  %512 = vmatmul.msk.bf16.vlgmr.msra.gmra.mxu1 %vm132_vm2, %v118_v30  ;;  %v680_v43 = vld [vmem:[#allocation11 + $0xd4] sm:$0xf0]  ;;  %v567_v45 = vld [vmem:[#allocation11 + $0x58] sm:$0xf0]  ;;  %v566_v47 = vor.u32 %v664_v41, %v565_v40  ;;  %v679_v48 = vld [vmem:[#allocation11 + $0xd4] sm:$0xf] }
  0x26   :  { %417 = vmatpush.bf16.msrb.mxu0 %v582_v19  ;;  %430 = vmatpush.bf16.msrb.mxu1 %v646_v23  ;;  %v631_v49 = vld [vmem:[#allocation11 + $0xd8] sm:$0xf0]  ;;  %v630_v50 = vor.u32 %v680_v43, %v629_v42  ;;  %v570_v51 = vor.u32 %v663_v44, %v567_v45  ;;  %v557_v52 = vld [vmem:[#allocation11 + $0x40] sm:$0xf]  ;;  %v662_v53 = vld [vmem:[#allocation11 + $0x44] sm:$0xf0] }
  0x27   :  { %444 = vmatpush.bf16.msrb.mxu2 %v578_v39  ;;  %v621_v54 = vld [vmem:[#allocation11 + $0xc0] sm:$0xf]  ;;  %v678_v55 = vld [vmem:[#allocation11 + $0xc4] sm:$0xf0]  ;;  %v661_v56 = vld [vmem:[#allocation11 + $0x44] sm:$0xf]  ;;  %v634_v58 = vor.u32 %v679_v48, %v631_v49  ;;  %v558_v59 = vor.u32 %v662_v53, %v557_v52 }
  0x28   :  { %v559_v57 = vld [vmem:[#allocation11 + $0x48] sm:$0xf0]  ;;  %457 = vmatpush.bf16.msrb.mxu3 %v642_v46  ;;  %v677_v60 = vld [vmem:[#allocation11 + $0xc4] sm:$0xf]  ;;  %v622_v62 = vor.u32 %v678_v55, %v621_v54  ;;  %v549_v0 = vld [vmem:[#allocation11 + $0x30] sm:$0xf] }
  0x29   :  { %v623_v61 = vld [vmem:[#allocation11 + $0xc8] sm:$0xf0]  ;;  %v562_v63 = vor.u32 %v661_v56, %v559_v57  ;;  %v660_v1 = vld [vmem:[#allocation11 + $0x34] sm:$0xf0]  ;;  %v613_v2 = vld [vmem:[#allocation11 + $0xb0] sm:$0xf] }
  0x2a   :  { %418 = vmatpush.bf16.msrb.mxu0 %v574_v35  ;;  %431 = vmatpush.bf16.msrb.mxu1 %v638_v38  ;;  %v676_v3 = vld [vmem:[#allocation11 + $0xb4] sm:$0xf0]  ;;  %v659_v4 = vld [vmem:[#allocation11 + $0x34] sm:$0xf]  ;;  %v551_v5 = vld [vmem:[#allocation11 + $0x38] sm:$0xf0]  ;;  %v626_v6 = vor.u32 %v677_v60, %v623_v61  ;;  %v550_v7 = vor.u32 %v660_v1, %v549_v0 }
  0x2b   :  { %445 = vmatpush.bf16.msrb.mxu2 %v570_v51  ;;  %v675_v8 = vld [vmem:[#allocation11 + $0xb4] sm:$0xf]  ;;  %v615_v9 = vld [vmem:[#allocation11 + $0xb8] sm:$0xf0]  ;;  %v614_v10 = vor.u32 %v676_v3, %v613_v2  ;;  %v554_v11 = vor.u32 %v659_v4, %v551_v5  ;;  %v541_v13 = vld [vmem:[#allocation11 + $0x20] sm:$0xf] }
  0x2c   :  { %458 = vmatpush.bf16.msrb.mxu3 %v634_v58  ;;  %v618_v12 = vor.u32 %v675_v8, %v615_v9  ;;  %v658_v14 = vld [vmem:[#allocation11 + $0x24] sm:$0xf0]  ;;  %v605_v15 = vld [vmem:[#allocation11 + $0xa0] sm:$0xf]  ;;  %v657_v18 = vld [vmem:[#allocation11 + $0x24] sm:$0xf] }
  0x2d   :  { %v542_v16 = vor.u32 %v658_v14, %v541_v13  ;;  %v674_v17 = vld [vmem:[#allocation11 + $0xa4] sm:$0xf0]  ;;  %v543_v19 = vld [vmem:[#allocation11 + $0x28] sm:$0xf0]  ;;  %v673_v22 = vld [vmem:[#allocation11 + $0xa4] sm:$0xf] }
  0x2e   :  { %419 = vmatpush.bf16.msrb.mxu0 %v566_v47  ;;  %432 = vmatpush.bf16.msrb.mxu1 %v630_v50  ;;  %v606_v20 = vor.u32 %v674_v17, %v605_v15  ;;  %v546_v21 = vor.u32 %v657_v18, %v543_v19  ;;  %v607_v23 = vld [vmem:[#allocation11 + $0xa8] sm:$0xf0]  ;;  %v533_v25 = vld [vmem:[#allocation11 + $0x10] sm:$0xf]  ;;  %v656_v26 = vld [vmem:[#allocation11 + $0x14] sm:$0xf0] }
  0x2f   :  { %446 = vmatpush.bf16.msrb.mxu2 %v562_v63  ;;  %v610_v24 = vor.u32 %v673_v22, %v607_v23  ;;  %v534_v27 = vor.u32 %v656_v26, %v533_v25  ;;  %v597_v28 = vld [vmem:[#allocation11 + $0x90] sm:$0xf]  ;;  %v672_v29 = vld [vmem:[#allocation11 + $0x94] sm:$0xf0]  ;;  %v655_v30 = vld [vmem:[#allocation11 + $0x14] sm:$0xf] }
  0x30   :  { %459 = vmatpush.bf16.msrb.mxu3 %v626_v6  ;;  %v598_v31 = vor.u32 %v672_v29, %v597_v28  ;;  %v535_v32 = vld [vmem:[#allocation11 + $0x18] sm:$0xf0]  ;;  %v671_v33 = vld [vmem:[#allocation11 + $0x94] sm:$0xf]  ;;  %v525_v37 = vld [vmem:[#allocation11] sm:$0xf]  ;;  %v482_v28 = vstv %s957_s6 }
  0x31   :  { %v538_v34 = vor.u32 %v655_v30, %v535_v32  ;;  %v599_v35 = vld [vmem:[#allocation11 + $0x98] sm:$0xf0]  ;;  %v654_v38 = vld [vmem:[#allocation11 + $0x4] sm:$0xf0]  ;;  %v589_v39 = vld [vmem:[#allocation11 + $0x80] sm:$0xf] }
  0x32   :  { %420 = vmatpush.bf16.msrb.mxu0 %v558_v59  ;;  %433 = vmatpush.bf16.msrb.mxu1 %v622_v62  ;;  %v602_v36 = vor.u32 %v671_v33, %v599_v35  ;;  %v526_v40 = vor.u32 %v654_v38, %v525_v37  ;;  %v670_v41 = vld [vmem:[#allocation11 + $0x84] sm:$0xf0]  ;;  %v653_v42 = vld [vmem:[#allocation11 + $0x4] sm:$0xf]  ;;  %v527_v43 = vld [vmem:[#allocation11 + $0x8] sm:$0xf0] }
  0x33   :  { %447 = vmatpush.bf16.msrb.mxu2 %v554_v11  ;;  %v590_v44 = vor.u32 %v670_v41, %v589_v39  ;;  %v530_v45 = vor.u32 %v653_v42, %v527_v43  ;;  %v669_v46 = vld [vmem:[#allocation11 + $0x84] sm:$0xf]  ;;  %v591_v47 = vld [vmem:[#allocation11 + $0x88] sm:$0xf0]  ;;  %s498_s10 = sshll.u32 %s958_s7, 4  ;;  %vm489_vm3 = vcmask 57344   ;;  %s499_s10 = int_to_ptr.hbm [resolvable:$true] %s498_s10 }
  0x34   :  { %460 = vmatpush.bf16.msrb.mxu3 %v618_v12  ;;  %v594_v48 = vor.u32 %v669_v46, %v591_v47  ;;  %v119_v49 = vld [vmem:[#allocation12] ss:$4 sm:$0x3]  ;;  %v121_v4 = vld [vmem:[#allocation12 + $0x1] ss:$4 sm:$0x3] }
  0x35   :  { %v210_v52 = vperm.slane %v119_v49, 0  ;;  %v211_v55 = vperm.slane %v119_v49, 1  ;;  %v253_v5 = vperm.slane %v121_v4, 0  ;;  %v254_v9 = vperm.slane %v121_v4, 1 }
  0x36   :  { %421 = vmatpush.bf16.msrb.mxu0 %v550_v7  ;;  %434 = vmatpush.bf16.msrb.mxu1 %v614_v10  ;;  %v123_v12 = vld [vmem:[#allocation12 + $0x2] ss:$4 sm:$0x3] }
  0x37   :  { %448 = vmatpush.bf16.msrb.mxu2 %v546_v21  ;;  %v472_v18 = vperm.slane %v123_v12, 0  ;;  %v473_v19 = vperm.slane %v123_v12, 1 }
  0x38   :  { %461 = vmatpush.bf16.msrb.mxu3 %v610_v24 }
  0x3a   :  { %422 = vmatpush.bf16.msrb.mxu0 %v542_v16  ;;  %435 = vmatpush.bf16.msrb.mxu1 %v606_v20 }
  0x3b   :  { %449 = vmatpush.bf16.msrb.mxu2 %v538_v34 }
  0x3c   :  { %462 = vmatpush.bf16.msrb.mxu3 %v602_v36 }
  0x3e   :  { %423 = vmatpush.bf16.msrb.mxu0 %v534_v27  ;;  %436 = vmatpush.bf16.msrb.mxu1 %v598_v31  ;;  %v485_v27 = vlaneseq }
  0x3f   :  { %450 = vmatpush.bf16.msrb.mxu2 %v530_v45 }
  0x40   :  { %463 = vmatpush.bf16.msrb.mxu3 %v594_v48  ;;  %v486_v29 = vand.u32 127, %v485_v27 }
  0x42   :  { %424 = vmatpush.bf16.msrb.mxu0 %v526_v40  ;;  %437 = vmatpush.bf16.msrb.mxu1 %v590_v44 }
  0xa2   :  { %v152_v50 = vpop.f32.mrf.mxu0  ;;  %v165_v51 = vpop.f32.mrf.mxu1 }
  0xa4   :  { %v192_v53 = vpop.f32.mrf.mxu2 }
  0xa5   :  { %v193_v54 = vadd.f32 %v192_v53, %v152_v50 }
  0xa6   :  { %v205_v56 = vpop.f32.mrf.mxu3 }
  0xa7   :  { %v214_v57 = vadd.f32 %v210_v52, %v193_v54  ;;  %v206_v58 = vadd.f32 %v205_v56, %v165_v51 }
  0xa9   :  { %v216_v59 = vmax.f32 %v214_v57, 0.0  ;;  %v215_v60 = vadd.f32 %v211_v55, %v206_v58 }
  0xaa   :  { %v154_v61 = vpop.f32.mrf.mxu0  ;;  %v167_v62 = vpop.f32.mrf.mxu1 }
  0xab   :  { %v218_v63 = vpack.c.bf16 %v216_v59, %v216_v59  ;;  %v217_v0 = vmax.f32 %v215_v60, 0.0 }
  0xac   :  { %v194_v1 = vpop.f32.mrf.mxu2 }
  0xad   :  { %v219_v2 = vpack.c.bf16 %v217_v0, %v217_v0  ;;  %425 = vmatmul.bf16.vlgmr.msrb.gmra.mxu0 %v218_v63  ;;  %451 = vmatmul.bf16.vlgmr.msrb.gmra.mxu2 %v218_v63 }
  0xae   :  { %v207_v3 = vpop.f32.mrf.mxu3 }
  0xaf   :  { %438 = vmatmul.bf16.vlgmr.msrb.gmra.mxu1 %v219_v2  ;;  %464 = vmatmul.bf16.vlgmr.msrb.gmra.mxu3 %v219_v2 }
 0x12a   :  { %v426_v6 = vpop.f32.mrf.mxu0 }
 0x12b   :  { %v427_v7 = vadd.f32 %v426_v6, %v253_v5 }
 0x12c   :  { %v439_v8 = vpop.f32.mrf.mxu1 }
 0x12d   :  { %v440_v10 = vadd.f32 %v439_v8, %v427_v7 }
 0x12f   :  { %v469_v16 = vmax.f32 %v440_v10, 0.0 }
 0x130   :  { %v452_v11 = vpop.f32.mrf.mxu2 }
 0x131   :  { %v453_v13 = vadd.f32 %v452_v11, %v254_v9  ;;  %v476_v22 = vmul.f32 %v472_v18, %v469_v16 }
 0x132   :  { %v465_v14 = vpop.f32.mrf.mxu3  ;;  %v428_v15 = vpop.f32.mrf.mxu0 }
 0x133   :  { %v466_v17 = vadd.f32 %v465_v14, %v453_v13 }
 0x134   :  { %v441_v20 = vpop.f32.mrf.mxu1 }
 0x135   :  { %v470_v21 = vmax.f32 %v466_v17, 0.0 }
 0x137   :  { %v477_v23 = vmul.f32 %v473_v19, %v470_v21 }
 0x138   :  { %v454_v24 = vpop.f32.mrf.mxu2 }
 0x139   :  { %v478_v25 = vadd.f32 %v477_v23, %v476_v22 }
 0x13a   :  { %v467_v26 = vpop.f32.mrf.mxu3 }
 0x13b   :  { %479 = vadd.xlane.f32.xlu0 %v478_v25 }
 0x1ae   :  { %v480_v30 = vpop.xlane.xlu0 %479 }
 0x1af   :  { %v483_v31 = vadd.f32 %v482_v28, %v480_v30 }
 0x1b1   :  { %v487_v32 = vperm.slane %v483_v31, %v486_v29 }
 0x1b3   :  { %490 = vst.msk [vmem:[#allocation14] sm:$0x1] %vm489_vm3, %v487_v32 }
 0x1b4   :  { %501 = dma.vmem_to_hbm [thread:$0]  %s497_s30, 16, %s499_s10, [#allocation5]  }
 0x1b5   :  { %870 = dma.done.wait [#allocation5], 16  }
 0x1b6   :  { %871 = vsyncadd [#allocation5], 4294967280 }
 0x1b7   :  { %506 = vsyncpa [#allocation4], 1 }
 0x1b8   :  { %507 = vsyncpa [#allocation7], 1 }
 0x1b9   :  { %508 = vsyncpa [#allocation10], 1 }
 0x1ba   :  { %509 = vsyncpa [#allocation13], 1 }
 0x1bb   :  { %510 = vsyncpa [#allocation5], 1 }

</bundles_post_ra>
